<compile_context>
chip_gen: v7x
topology: tpu7x:2x2x1
jax: 0.10.0
libtpu: 0.0.40
codegen_flags: <defaults>
</compile_context>

<pallas_src>
import functools

import jax
import jax.numpy as jnp
from jax import lax
from jax.experimental import pallas as pl
from jax.experimental.pallas import tpu as pltpu


def _round_up(x: int, m: int) -> int:
    return ((x + m - 1) // m) * m


def _make_mlp_kernel(tile_b: int, batch: int):
    """Fused one-hot-embedding + Linear->ReLU->Linear->ReLU->Linear.

    Emits a lane-dense transposed output tile plus a masked per-tile
    column-L1 partial for the two-pass batch-axis L1 norm.
    """

    def kernel(x_ref, idx_ref, ftis_ref, fsex_ref, b1_ref,
               w1_ref, w2_ref, b2_ref, w3_ref, b3_ref,
               o_ref, l1_ref):
        # ---- in-kernel embedding fold: one-hot(idx) @ folded tables (MXU) ----
        idx = idx_ref[...]                               # (tile, 2) int32
        ti = idx[:, 0:1]                                 # (tile, 1)
        si = idx[:, 1:2]                                 # (tile, 1)
        n_tis = ftis_ref.shape[0]
        n_sex = fsex_ref.shape[0]
        onehot_t = (lax.broadcasted_iota(jnp.int32, (tile_b, n_tis), 1) == ti
                    ).astype(jnp.float32)                # (tile, 32)
        onehot_s = (lax.broadcasted_iota(jnp.int32, (tile_b, n_sex), 1) == si
                    ).astype(jnp.float32)                # (tile, 4)
        emb = (jnp.dot(onehot_t, ftis_ref[...],
                       preferred_element_type=jnp.float32)
               + jnp.dot(onehot_s, fsex_ref[...],
                         preferred_element_type=jnp.float32)
               + b1_ref[...])                            # (tile, H1)

        # ---- first_layer: Linear(feature slice) + folded emb/bias + ReLU ----
        h = jnp.dot(x_ref[...], w1_ref[...],
                    preferred_element_type=jnp.float32)
        h = jnp.maximum(h + emb, 0.0)
        # ---- mediate_layer: Linear + ReLU ----
        h = jnp.dot(h, w2_ref[...],
                    preferred_element_type=jnp.float32) + b2_ref[...]
        h = jnp.maximum(h, 0.0)
        # ---- last_layer: Linear (no activation) ----
        out = jnp.dot(h, w3_ref[...],
                      preferred_element_type=jnp.float32) + b3_ref[...]

        # Lane-dense store: (tile, O) -> (O, tile); O=8 would otherwise make
        # every store an 8/128-lane masked vst (the saturating slot).
        out_t = out.T                                    # (O, tile)
        o_ref[...] = out_t

        # Masked per-tile column-L1 partial (batch axis is the lane axis).
        # jnp.where (not multiply) so garbage in ragged/unwritten lanes of the
        # last tile cannot poison the reduction.
        col = pl.program_id(0) * tile_b + lax.broadcasted_iota(
            jnp.int32, out_t.shape, 1)
        masked = jnp.where(col < batch, jnp.abs(out_t), 0.0)
        l1_ref[...] = jnp.sum(masked, axis=1, keepdims=True)[None]   # (1, O, 1)

    return kernel


def init_params(key, feature_channel, hidden_list, output_channel,
                embedding_dim=32):
    ks = jax.random.split(key, 8)
    in_dim = feature_channel + 2 * embedding_dim
    scale = 0.1
    return {
        "tissue_table": scale * jax.random.normal(ks[0], (32, embedding_dim), jnp.float32),
        "sex_table":    scale * jax.random.normal(ks[1], (4, embedding_dim), jnp.float32),
        "w1": scale * jax.random.normal(ks[2], (in_dim, hidden_list[0]), jnp.float32),
        "b1": scale * jax.random.normal(ks[3], (1, hidden_list[0]), jnp.float32),
        "w2": scale * jax.random.normal(ks[4], (hidden_list[0], hidden_list[1]), jnp.float32),
        "b2": scale * jax.random.normal(ks[5], (1, hidden_list[1]), jnp.float32),
        "w3": scale * jax.random.normal(ks[6], (hidden_list[1], output_channel), jnp.float32),
        "b3": scale * jax.random.normal(ks[7], (1, output_channel), jnp.float32),
    }


@functools.partial(jax.jit, static_argnames=("tile_b",))
def fcnet_embedding_forward(feature, tissue_index, sex_index, params,
                            tile_b: int = 1024):
    feature = feature.astype(jnp.float32)
    B, F = feature.shape
    H1, H2 = params["w2"].shape
    O = params["w3"].shape[1]
    n_tis = params["tissue_table"].shape[0]
    n_sex = params["sex_table"].shape[0]

    # ---- fold embedding tables through w1's embedding rows (tiny XLA matmuls) ----
    w1 = params["w1"]                                    # (F + 64, H1)
    w1_feat = w1[:F]                                     # (F, H1)
    folded_tis = params["tissue_table"] @ w1[F:F + n_tis]        # (32, H1)
    folded_sex = params["sex_table"] @ w1[F + n_tis:]            # (4,  H1)

    # Pack both index streams into one (B, 2) int32 input (8 B/row total).
    idx = jnp.stack([tissue_index, sex_index], axis=1).astype(jnp.int32)

    # ---- batch tiling: multiple of 128 (lane-dense transposed output blocks),
    # capped so large batches split into >= 2 tiles (both v7x TensorCores). ----
    tile_req = max(128, (tile_b // 128) * 128)
    half = _round_up(pl.cdiv(B, 2), 128)
    tile = min(tile_req, half)
    num_tiles = pl.cdiv(B, tile)
    b_pad = num_tiles * tile

    kernel = _make_mlp_kernel(tile, B)

    def full_spec(shape):
        return pl.BlockSpec(shape, lambda i: (0, 0))

    flops = 2 * B * (F * H1 + n_tis * H1 + n_sex * H1 + H1 * H2 + H2 * O)
    bytes_accessed = 4 * (B * F + B * 2 + O * b_pad + num_tiles * O
                          + w1_feat.size + folded_tis.size + folded_sex.size
                          + params["b1"].size + params["w2"].size
                          + params["b2"].size + params["w3"].size
                          + params["b3"].size)

    out_t, l1_part = pl.pallas_call(
        kernel,
        grid=(num_tiles,),
        in_specs=[
            pl.BlockSpec((tile, F), lambda i: (i, 0)),     # feature tile
            pl.BlockSpec((tile, 2), lambda i: (i, 0)),     # [tissue, sex] ids
            full_spec(folded_tis.shape),                   # (32, H1)
            full_spec(folded_sex.shape),                   # (4,  H1)
            full_spec(params["b1"].shape),                 # (1,  H1)
            full_spec(w1_feat.shape),                      # (F,  H1)
            full_spec(params["w2"].shape),                 # (H1, H2)
            full_spec(params["b2"].shape),                 # (1,  H2)
            full_spec(params["w3"].shape),                 # (H2, O)
            full_spec(params["b3"].shape),                 # (1,  O)
        ],
        out_specs=(
            pl.BlockSpec((O, tile), lambda i: (0, i)),     # lane-dense output
            pl.BlockSpec((1, O, 1), lambda i: (i, 0, 0)),  # L1 partials
        ),
        out_shape=(
            jax.ShapeDtypeStruct((O, b_pad), jnp.float32),
            jax.ShapeDtypeStruct((num_tiles, O, 1), jnp.float32),
        ),
        compiler_params=pltpu.CompilerParams(
            dimension_semantics=("parallel",),
            vmem_limit_bytes=32 * 1024 * 1024),
        cost_estimate=pl.CostEstimate(flops=flops, transcendentals=0,
                                      bytes_accessed=bytes_accessed),
    )(feature, idx, folded_tis, folded_sex, params["b1"],
      w1_feat, params["w2"], params["b2"], params["w3"], params["b3"])

    # ---- second pass of the two-pass L1 norm: tiny reduction, normalize,
    # and transpose back to the module's (B, O) row-major result. ----
    l1 = jnp.sum(l1_part, axis=0)                        # (O, 1) global column L1
    return (out_t[:, :B] / jnp.sqrt(l1)).T


def reference_forward(feature, tissue_index, sex_index, params):
    tissue_emb = params["tissue_table"][tissue_index]
    sex_emb = params["sex_table"][sex_index]
    x = jnp.concatenate([feature, tissue_emb, sex_emb], axis=1)
    h = jnp.maximum(x @ params["w1"] + params["b1"], 0.0)
    h = jnp.maximum(h @ params["w2"] + params["b2"], 0.0)
    out = h @ params["w3"] + params["b3"]
    return out / jnp.sqrt(jnp.sum(jnp.abs(out), axis=0, keepdims=True))


if __name__ == "__main__":
    B = 300                   # not a multiple of the tile (or of 8): exercises
                              # the ragged, masked last tile without padding
    feature_channel = 16
    hidden_list = [32, 32]
    output_channel = 8

    key = jax.random.PRNGKey(0)
    k_param, k_feat, k_tis, k_sex = jax.random.split(key, 4)

    params = init_params(k_param, feature_channel, hidden_list, output_channel)
    feature = jax.random.normal(k_feat, (B, feature_channel), jnp.float32)
    tissue_index = jax.random.randint(k_tis, (B,), 0, 32)
    sex_index = jax.random.randint(k_sex, (B,), 0, 4)

    # tile_b=128 forces a 3-step, ragged-tail grid at this small test size;
    # production batches use the default (1024) or larger.
    out = fcnet_embedding_forward(feature, tissue_index, sex_index, params,
                                  tile_b=128)
    out = jax.block_until_ready(out)

    ref = reference_forward(feature, tissue_index, sex_index, params)
    assert out.shape == (B, output_channel)
    assert jnp.allclose(out, ref, rtol=1e-3, atol=1e-3), "mismatch vs reference"

    print("KERNEL_OK")
</pallas_src>

<mosaic_0001>
module attributes {stable_mosaic.version = 11 : i64} {
  func.func @kernel(%arg0: i32, %arg1: memref<128x16xf32, #tpu.memory_space<vmem>>, %arg2: memref<128x2xi32, #tpu.memory_space<vmem>>, %arg3: memref<32x32xf32, #tpu.memory_space<vmem>>, %arg4: memref<4x32xf32, #tpu.memory_space<vmem>>, %arg5: memref<1x32xf32, #tpu.memory_space<vmem>>, %arg6: memref<16x32xf32, #tpu.memory_space<vmem>>, %arg7: memref<32x32xf32, #tpu.memory_space<vmem>>, %arg8: memref<1x32xf32, #tpu.memory_space<vmem>>, %arg9: memref<32x8xf32, #tpu.memory_space<vmem>>, %arg10: memref<1x8xf32, #tpu.memory_space<vmem>>, %arg11: memref<8x128xf32, #tpu.memory_space<vmem>>, %arg12: memref<1x8x1xf32, #tpu.memory_space<vmem>>) attributes {dimension_semantics = [#tpu.dimension_semantics<parallel>], iteration_bounds = array<i64: 3>, scalar_prefetch = 0 : i64, scratch_operands = 0 : i64, tpu.core_type = #tpu.core_type<tc>, window_params = [{transform_indices = @transform_0, window_bounds = array<i64: 128, 16>}, {transform_indices = @transform_1, window_bounds = array<i64: 128, 2>}, {pipeline_mode = #tpu.pipeline_mode<synchronous>, transform_indices = @transform_2, window_bounds = array<i64: 32, 32>}, {pipeline_mode = #tpu.pipeline_mode<synchronous>, transform_indices = @transform_3, window_bounds = array<i64: 4, 32>}, {pipeline_mode = #tpu.pipeline_mode<synchronous>, transform_indices = @transform_4, window_bounds = array<i64: 1, 32>}, {pipeline_mode = #tpu.pipeline_mode<synchronous>, transform_indices = @transform_5, window_bounds = array<i64: 16, 32>}, {pipeline_mode = #tpu.pipeline_mode<synchronous>, transform_indices = @transform_6, window_bounds = array<i64: 32, 32>}, {pipeline_mode = #tpu.pipeline_mode<synchronous>, transform_indices = @transform_7, window_bounds = array<i64: 1, 32>}, {pipeline_mode = #tpu.pipeline_mode<synchronous>, transform_indices = @transform_8, window_bounds = array<i64: 32, 8>}, {pipeline_mode = #tpu.pipeline_mode<synchronous>, transform_indices = @transform_9, window_bounds = array<i64: 1, 8>}, {transform_indices = @transform_10, window_bounds = array<i64: 8, 128>}, {transform_indices = @transform_11, window_bounds = array<i64: 1, 8, 1>}]} {
    %c0 = arith.constant 0 : index
    %c0_0 = arith.constant 0 : index
    %0 = vector.load %arg2[%c0, %c0_0] : memref<128x2xi32, #tpu.memory_space<vmem>>, vector<128x2xi32>
    %1 = vector.extract_strided_slice %0 {offsets = [0, 0], sizes = [128, 1], strides = [1, 1]} : vector<128x2xi32> to vector<128x1xi32>
    %2 = vector.extract_strided_slice %0 {offsets = [0, 1], sizes = [128, 1], strides = [1, 1]} : vector<128x2xi32> to vector<128x1xi32>
    %3 = tpu.iota {dimensions = array<i32: 1>} : vector<128x32xi32>
    %4 = vector.broadcast %1 : vector<128x1xi32> to vector<128x32xi32>
    %5 = arith.cmpi eq, %3, %4 : vector<128x32xi32>
    %6 = arith.extui %5 : vector<128x32xi1> to vector<128x32xi32>
    %7 = arith.sitofp %6 : vector<128x32xi32> to vector<128x32xf32>
    %8 = tpu.iota {dimensions = array<i32: 1>} : vector<128x4xi32>
    %9 = vector.broadcast %2 : vector<128x1xi32> to vector<128x4xi32>
    %10 = arith.cmpi eq, %8, %9 : vector<128x4xi32>
    %11 = arith.extui %10 : vector<128x4xi1> to vector<128x4xi32>
    %12 = arith.sitofp %11 : vector<128x4xi32> to vector<128x4xf32>
    %c0_1 = arith.constant 0 : index
    %c0_2 = arith.constant 0 : index
    %13 = vector.load %arg3[%c0_1, %c0_2] : memref<32x32xf32, #tpu.memory_space<vmem>>, vector<32x32xf32>
    %cst = arith.constant dense<0.000000e+00> : vector<128x32xf32>
    %14 = tpu.matmul %7, %13, %cst {dimension_numbers = #tpu.dot_dimension_numbers<[1], [0], [0], [1], [0, 0, 1, 1], [], []>} : vector<128x32xf32>, vector<32x32xf32>, vector<128x32xf32> -> vector<128x32xf32>
    %c0_3 = arith.constant 0 : index
    %c0_4 = arith.constant 0 : index
    %15 = vector.load %arg4[%c0_3, %c0_4] : memref<4x32xf32, #tpu.memory_space<vmem>>, vector<4x32xf32>
    %cst_5 = arith.constant dense<0.000000e+00> : vector<128x32xf32>
    %16 = tpu.matmul %12, %15, %cst_5 {dimension_numbers = #tpu.dot_dimension_numbers<[1], [0], [0], [1], [0, 0, 1, 1], [], []>} : vector<128x4xf32>, vector<4x32xf32>, vector<128x32xf32> -> vector<128x32xf32>
    %17 = arith.addf %14, %16 : vector<128x32xf32>
    %c0_6 = arith.constant 0 : index
    %c0_7 = arith.constant 0 : index
    %18 = vector.load %arg5[%c0_6, %c0_7] : memref<1x32xf32, #tpu.memory_space<vmem>>, vector<1x32xf32>
    %19 = vector.broadcast %18 : vector<1x32xf32> to vector<128x32xf32>
    %20 = arith.addf %17, %19 : vector<128x32xf32>
    %c0_8 = arith.constant 0 : index
    %c0_9 = arith.constant 0 : index
    %21 = vector.load %arg1[%c0_8, %c0_9] : memref<128x16xf32, #tpu.memory_space<vmem>>, vector<128x16xf32>
    %c0_10 = arith.constant 0 : index
    %c0_11 = arith.constant 0 : index
    %22 = vector.load %arg6[%c0_10, %c0_11] : memref<16x32xf32, #tpu.memory_space<vmem>>, vector<16x32xf32>
    %cst_12 = arith.constant dense<0.000000e+00> : vector<128x32xf32>
    %23 = tpu.matmul %21, %22, %cst_12 {dimension_numbers = #tpu.dot_dimension_numbers<[1], [0], [0], [1], [0, 0, 1, 1], [], []>} : vector<128x16xf32>, vector<16x32xf32>, vector<128x32xf32> -> vector<128x32xf32>
    %24 = arith.addf %23, %20 : vector<128x32xf32>
    %cst_13 = arith.constant 0.000000e+00 : f32
    %25 = vector.broadcast %cst_13 : f32 to vector<128x32xf32>
    %26 = arith.maximumf %24, %25 : vector<128x32xf32>
    %c0_14 = arith.constant 0 : index
    %c0_15 = arith.constant 0 : index
    %27 = vector.load %arg7[%c0_14, %c0_15] : memref<32x32xf32, #tpu.memory_space<vmem>>, vector<32x32xf32>
    %cst_16 = arith.constant dense<0.000000e+00> : vector<128x32xf32>
    %28 = tpu.matmul %26, %27, %cst_16 {dimension_numbers = #tpu.dot_dimension_numbers<[1], [0], [0], [1], [0, 0, 1, 1], [], []>} : vector<128x32xf32>, vector<32x32xf32>, vector<128x32xf32> -> vector<128x32xf32>
    %c0_17 = arith.constant 0 : index
    %c0_18 = arith.constant 0 : index
    %29 = vector.load %arg8[%c0_17, %c0_18] : memref<1x32xf32, #tpu.memory_space<vmem>>, vector<1x32xf32>
    %30 = vector.broadcast %29 : vector<1x32xf32> to vector<128x32xf32>
    %31 = arith.addf %28, %30 : vector<128x32xf32>
    %cst_19 = arith.constant 0.000000e+00 : f32
    %32 = vector.broadcast %cst_19 : f32 to vector<128x32xf32>
    %33 = arith.maximumf %31, %32 : vector<128x32xf32>
    %c0_20 = arith.constant 0 : index
    %c0_21 = arith.constant 0 : index
    %34 = vector.load %arg9[%c0_20, %c0_21] : memref<32x8xf32, #tpu.memory_space<vmem>>, vector<32x8xf32>
    %cst_22 = arith.constant dense<0.000000e+00> : vector<128x8xf32>
    %35 = tpu.matmul %33, %34, %cst_22 {dimension_numbers = #tpu.dot_dimension_numbers<[1], [0], [0], [1], [0, 0, 1, 1], [], []>} : vector<128x32xf32>, vector<32x8xf32>, vector<128x8xf32> -> vector<128x8xf32>
    %c0_23 = arith.constant 0 : index
    %c0_24 = arith.constant 0 : index
    %36 = vector.load %arg10[%c0_23, %c0_24] : memref<1x8xf32, #tpu.memory_space<vmem>>, vector<1x8xf32>
    %37 = vector.broadcast %36 : vector<1x8xf32> to vector<128x8xf32>
    %38 = arith.addf %35, %37 : vector<128x8xf32>
    %39 = tpu.transpose %38, [1, 0] : vector<128x8xf32> -> vector<8x128xf32>
    %c0_25 = arith.constant 0 : index
    %c0_26 = arith.constant 0 : index
    %40 = vector.load %arg11[%c0_25, %c0_26] : memref<8x128xf32, #tpu.memory_space<vmem>>, vector<8x128xf32>
    tpu.vector_store %arg11[%c0_25, %c0_26], %39 {strides = array<i32>} : memref<8x128xf32, #tpu.memory_space<vmem>>, vector<8x128xf32>,
    %c128_i32 = arith.constant 128 : i32
    %41 = arith.muli %arg0, %c128_i32 : i32
    %42 = tpu.iota {dimensions = array<i32: 1>} : vector<8x128xi32>
    %43 = vector.broadcast %41 : i32 to vector<8x128xi32>
    %44 = arith.addi %43, %42 : vector<8x128xi32>
    %c300_i32 = arith.constant 300 : i32
    %45 = vector.broadcast %c300_i32 : i32 to vector<8x128xi32>
    %46 = arith.cmpi slt, %44, %45 : vector<8x128xi32>
    %47 = math.absf %39 : vector<8x128xf32>
    %cst_27 = arith.constant 0.000000e+00 : f32
    %48 = vector.broadcast %cst_27 : f32 to vector<8x128xf32>
    %49 = arith.select %46, %47, %48 : vector<8x128xi1>, vector<8x128xf32>
    %cst_28 = arith.constant dense<0.000000e+00> : vector<8xf32>
    %50 = vector.multi_reduction <add>, %49, %cst_28 [1] : vector<8x128xf32> to vector<8xf32>
    %51 = vector.shape_cast %50 : vector<8xf32> to vector<8x1xf32>
    %52 = vector.shape_cast %51 : vector<8x1xf32> to vector<1x8x1xf32>
    %c0_29 = arith.constant 0 : index
    %c0_30 = arith.constant 0 : index
    %c0_31 = arith.constant 0 : index
    %53 = vector.load %arg12[%c0_29, %c0_30, %c0_31] : memref<1x8x1xf32, #tpu.memory_space<vmem>>, vector<1x8x1xf32>
    tpu.vector_store %arg12[%c0_29, %c0_30, %c0_31], %52 {strides = array<i32>} : memref<1x8x1xf32, #tpu.memory_space<vmem>>, vector<1x8x1xf32>,
    return
  }
  func.func @transform_0(%arg0: i32) -> (i32, i32) {
    %c0_i32 = arith.constant 0 : i32
    %c0_i32_0 = arith.constant 0 : i32
    return %arg0, %c0_i32 : i32, i32
  }
  func.func @transform_1(%arg0: i32) -> (i32, i32) {
    %c0_i32 = arith.constant 0 : i32
    %c0_i32_0 = arith.constant 0 : i32
    return %arg0, %c0_i32 : i32, i32
  }
  func.func @transform_2(%arg0: i32) -> (i32, i32) {
    %c0_i32 = arith.constant 0 : i32
    %c0_i32_0 = arith.constant 0 : i32
    %c0_i32_1 = arith.constant 0 : i32
    return %c0_i32, %c0_i32_0 : i32, i32
  }
  func.func @transform_3(%arg0: i32) -> (i32, i32) {
    %c0_i32 = arith.constant 0 : i32
    %c0_i32_0 = arith.constant 0 : i32
    %c0_i32_1 = arith.constant 0 : i32
    return %c0_i32, %c0_i32_0 : i32, i32
  }
  func.func @transform_4(%arg0: i32) -> (i32, i32) {
    %c0_i32 = arith.constant 0 : i32
    %c0_i32_0 = arith.constant 0 : i32
    %c0_i32_1 = arith.constant 0 : i32
    return %c0_i32, %c0_i32_0 : i32, i32
  }
  func.func @transform_5(%arg0: i32) -> (i32, i32) {
    %c0_i32 = arith.constant 0 : i32
    %c0_i32_0 = arith.constant 0 : i32
    %c0_i32_1 = arith.constant 0 : i32
    return %c0_i32, %c0_i32_0 : i32, i32
  }
  func.func @transform_6(%arg0: i32) -> (i32, i32) {
    %c0_i32 = arith.constant 0 : i32
    %c0_i32_0 = arith.constant 0 : i32
    %c0_i32_1 = arith.constant 0 : i32
    return %c0_i32, %c0_i32_0 : i32, i32
  }
  func.func @transform_7(%arg0: i32) -> (i32, i32) {
    %c0_i32 = arith.constant 0 : i32
    %c0_i32_0 = arith.constant 0 : i32
    %c0_i32_1 = arith.constant 0 : i32
    return %c0_i32, %c0_i32_0 : i32, i32
  }
  func.func @transform_8(%arg0: i32) -> (i32, i32) {
    %c0_i32 = arith.constant 0 : i32
    %c0_i32_0 = arith.constant 0 : i32
    %c0_i32_1 = arith.constant 0 : i32
    return %c0_i32, %c0_i32_0 : i32, i32
  }
  func.func @transform_9(%arg0: i32) -> (i32, i32) {
    %c0_i32 = arith.constant 0 : i32
    %c0_i32_0 = arith.constant 0 : i32
    %c0_i32_1 = arith.constant 0 : i32
    return %c0_i32, %c0_i32_0 : i32, i32
  }
  func.func @transform_10(%arg0: i32) -> (i32, i32) {
    %c0_i32 = arith.constant 0 : i32
    %c0_i32_0 = arith.constant 0 : i32
    return %c0_i32, %arg0 : i32, i32
  }
  func.func @transform_11(%arg0: i32) -> (i32, i32, i32) {
    %c0_i32 = arith.constant 0 : i32
    %c0_i32_0 = arith.constant 0 : i32
    %c0_i32_1 = arith.constant 0 : i32
    return %arg0, %c0_i32, %c0_i32_0 : i32, i32, i32
  }
}

</mosaic_0001>

<bundles_post_ra>
// kernel: fcnet_embedding_forward.1
= control target key start
LH: loop header
LB: loop body
LE: loop exit
PB: predicated region body
PF: predicated region fallthrough
CT: control target
= control target key end

     0   :  { %s2422_s17 = smov 0   ;;  %s2721_s0 = inlined_call_operand.vmem [shape: f32[300,16], index: 0, kind: input, shape index: {}]   ;;  %s2722_s1 = inlined_call_operand.vmem [shape: s32[300,2], index: 1, kind: input, shape index: {}]   ;;  %s2723_s2 = inlined_call_operand.vmem [shape: f32[32,32], index: 2, kind: input, shape index: {}]   ;;  %s2724_s3 = inlined_call_operand.vmem [shape: f32[4,32], index: 3, kind: input, shape index: {}]   ;;  %s2725_s4 = inlined_call_operand.vmem [shape: f32[1,32], index: 4, kind: input, shape index: {}]   ;;  %s2726_s5 = inlined_call_operand.vmem [shape: f32[16,32], index: 5, kind: input, shape index: {}]   ;;  %s2727_s6 = inlined_call_operand.vmem [shape: f32[32,32], index: 6, kind: input, shape index: {}]   ;;  %s2728_s7 = inlined_call_operand.vmem [shape: f32[1,32], index: 7, kind: input, shape index: {}]   ;;  %s2729_s8 = inlined_call_operand.vmem [shape: f32[32,8], index: 8, kind: input, shape index: {}]   ;;  %s2730_s9 = inlined_call_operand.vmem [shape: f32[1,8], index: 9, kind: input, shape index: {}]   ;;  %s2731_s10 = inlined_call_operand.vmem [shape: f32[8,384], index: 10, kind: output, shape index: {0}]   ;;  %s2732_s11 = inlined_call_operand.vmem [shape: f32[3,8,1], index: 11, kind: output, shape index: {1}]  }
   0x1 LB: > { %s2428_s18 = sadd.s32 4294967295, %s2357_s17   ;;  %p1885_p0 = scmp.ge.s32.totalorder %s2357_s17, 1  ;;  %s2357_s17 = sphi %s2422_s17, %s22_s17  }
   0x2   : > { %p368_p1 = scmp.lt.s32.totalorder %s2357_s17, 4 }
   0x4   : > { %p369_p2 = pnand %p1885_p0, %p368_p1 }
   0x5   : > { %s1886_s19 = sshll.u32 (!%p369_p2), %s2428_s18, 4  ;;  %v2359_v0 = vmov (!%p369_p2), 1   ;;  %vm724_vm0 = vcmask (!%p369_p2), 1043456   ;;  %v674_v6 = vld [vmem:[%s2724_s3] sm:$0xf] (!%p369_p2)  ;;  %v671_v9 = vld [vmem:[%s2723_s2 + $0x8] sm:$0xff] (!%p369_p2)  ;;  %v476_v25 = vlaneseq (!%p369_p2) }
   0x6   : > { %372 = sbr.rel (%p369_p2) target bundleno = 1125 (0x465), region = 60  ;;  %2346 = vset.pattern.permute.xlu1 (!%p369_p2), %v2359_v0  ;;  %2345 = vset.pattern.permute.xlu0 (!%p369_p2), %v2359_v0  ;;  %p429_p3 = scmp.lt.s32.totalorder (!%p369_p2), %s1886_s19, 37  ;;  %v670_v8 = vld [vmem:[%s2723_s2] sm:$0xff] (!%p369_p2)  ;;  %v2360_v13 = vmov (!%p369_p2), 0   ;;  %v1319_v23 = vld [vmem:[%s2727_s6 + $0x8] sm:$0xff] (!%p369_p2)  ;;  %vm675_vm1 = vcmask (!%p369_p2), 31744  }
   0x7   : > { %2106 = vmatprep.subr.msk.mxu0 (!%p369_p2), %vm724_vm0, %v674_v6  ;;  %2284 = vmatprep.subr.msk.mxu1 (!%p369_p2), %vm724_vm0, %v674_v6  ;;  %v2458_v10 = vpack.c.bf16 (!%p369_p2), %v671_v9, %v670_v8  ;;  %v1318_v22 = vld [vmem:[%s2727_s6] sm:$0xff] (!%p369_p2)  ;;  %v2480_v26 = vand.u32 (!%p369_p2), 127, %v476_v25  ;;  %v2361_v29 = vmov (!%p369_p2), 0.0   ;;  %v672_v31 = vld [vmem:[%s2723_s2 + $0x10] sm:$0xff] (!%p369_p2)  ;;  %v673_v32 = vld [vmem:[%s2723_s2 + $0x18] sm:$0xff] (!%p369_p2)  ;;  %vm873_vm10 = vcmask (!%p369_p2), 261120  }
   0x8   : > { %2107 = vmatpush3.msk.msra.mxu0 (!%p369_p2), %vm724_vm0, %v674_v6  ;;  %2285 = vmatpush3.msk.msra.mxu1 (!%p369_p2), %vm724_vm0, %v674_v6  ;;  %v2477_v24 = vpack.c.bf16 (!%p369_p2), %v1319_v23, %v1318_v22  ;;  %v2260_v35 = vpack.c.bf16 (!%p369_p2), %v673_v32, %v672_v31  ;;  %v1106_v37 = vld [vmem:[%s2726_s5] sm:$0xff] (!%p369_p2)  ;;  %v1107_v38 = vld [vmem:[%s2726_s5 + $0x8] sm:$0xff] (!%p369_p2)  ;;  %p452_p4 = scmp.lt.s32.totalorder (!%p369_p2), %s2428_s18, 2 }
   0x9   : > { %2257 = vmatprep.subr.bf16.mxu0 (!%p369_p2), %v2458_v10  ;;  %v2264_v42 = vpack.c.bf16 (!%p369_p2), %v1107_v38, %v1106_v37 }
   0xa   : > { %2269 = vmatprep.subr.bf16.mxu1 (!%p369_p2), %v2477_v24 }
   0xd   : > { %s2734_s19 = smov (!%p429_p3, %s1886_s19), 37 }
   0xe   : > { %s1887_s20 = sshll.u32 %s2734_s19, 3 }
   0xf   : > { %s2441_s23 = scalar_lea.vmem %s2722_s1, %s1887_s20  ;;  %s2564_s29 = scalar_lea.vmem %s2721_s0, %s1887_s20 }
  0x10   : > { %v462_v1 = vld [vmem:[%s2441_s23 + $0x10] sm:$0xff]  ;;  %v460_v2 = vld [vmem:[%s2441_s23] sm:$0xff]  ;;  %v463_v3 = vld [vmem:[%s2441_s23 + $0x18] sm:$0xff]  ;;  %s2008_s20 = sshll.u32 %s2428_s18, 7  ;;  %s2736_s18 = smov (!%p452_p4, %s2428_s18), 2 }
  0x11   : > { %581 = vperm.xlu1 %2346, %v462_v1   ;;  %575 = vperm.xlu0 %2345, %v460_v2   ;;  %v461_v4 = vld [vmem:[%s2441_s23 + $0x8] sm:$0xff]  ;;  %v464_v7 = vld [vmem:[%s2441_s23 + $0x20] sm:$0xff]  ;;  %v467_v11 = vld [vmem:[%s2441_s23 + $0x38] sm:$0xff]  ;;  %s1890_s30 = sshll.u32 %s2736_s18, 3 }
  0x12   : > { %v465_v5 = vld [vmem:[%s2441_s23 + $0x28] sm:$0xff]  ;;  %v466_v12 = vld [vmem:[%s2441_s23 + $0x30] sm:$0xff]  ;;  %v468_v14 = vld [vmem:[%s2441_s23 + $0x40] sm:$0xff]  ;;  %s455_s14 = scalar_lea.vmem %s2731_s10, %s1890_s30  ;;  %s459_s21 = scalar_lea.vmem %s2732_s11, %s1890_s30 }
  0x13   : > { %v469_v15 = vld [vmem:[%s2441_s23 + $0x48] sm:$0xff]  ;;  %v470_v16 = vld [vmem:[%s2441_s23 + $0x50] sm:$0xff]  ;;  %v471_v17 = vld [vmem:[%s2441_s23 + $0x58] sm:$0xff] }
  0x14   : > { %v472_v18 = vld [vmem:[%s2441_s23 + $0x60] sm:$0xff]  ;;  %v473_v19 = vld [vmem:[%s2441_s23 + $0x68] sm:$0xff]  ;;  %v474_v20 = vld [vmem:[%s2441_s23 + $0x70] sm:$0xff] }
  0x15   : > { %584 = vperm.xlu1 %2346, %v463_v3   ;;  %578 = vperm.xlu0 %2345, %v461_v4   ;;  %v475_v21 = vld [vmem:[%s2441_s23 + $0x78] sm:$0xff]  ;;  %v1091_v23 = vld [vmem:[%s2564_s29 + $0x8] sm:$0xff] }
  0x16   : > { %v1095_v38 = vld [vmem:[%s2564_s29 + $0x28] sm:$0xff] }
  0x19   : > { %590 = vperm.xlu1 %2346, %v465_v5   ;;  %587 = vperm.xlu0 %2345, %v464_v7  }
  0x1d   : > { %596 = vperm.xlu1 %2346, %v467_v11   ;;  %593 = vperm.xlu0 %2345, %v466_v12  }
  0x21   : > { %2348 = vset.pattern.permute.xlu1 %v2360_v13  ;;  %2347 = vset.pattern.permute.xlu0 %v2360_v13 }
  0x22   : > { %482 = vperm.xlu1 %2348, %v461_v4   ;;  %479 = vperm.xlu0 %2347, %v460_v2  }
  0x26   : > { %485 = vperm.xlu1 %2348, %v462_v1   ;;  %488 = vperm.xlu0 %2347, %v463_v3  }
  0x2a   : > { %491 = vperm.xlu1 %2348, %v464_v7   ;;  %494 = vperm.xlu0 %2347, %v465_v5  }
  0x2e   : > { %497 = vperm.xlu1 %2348, %v466_v12   ;;  %500 = vperm.xlu0 %2347, %v467_v11  }
  0x32   : > { %503 = vperm.xlu1 %2348, %v468_v14   ;;  %506 = vperm.xlu0 %2347, %v469_v15  }
  0x36   : > { %509 = vperm.xlu1 %2348, %v470_v16   ;;  %512 = vperm.xlu0 %2347, %v471_v17  }
  0x3a   : > { %515 = vperm.xlu1 %2348, %v472_v18   ;;  %518 = vperm.xlu0 %2347, %v473_v19  }
  0x3e   : > { %521 = vperm.xlu1 %2348, %v474_v20   ;;  %524 = vperm.xlu0 %2347, %v475_v21  }
  0x42   : > { %2349 = vset.pattern.permute.xlu1 %v2359_v0  ;;  %2350 = vset.pattern.permute.xlu0 %v2359_v0 }
  0x43   : > { %599 = vperm.xlu1 %2349, %v468_v14   ;;  %602 = vperm.xlu0 %2350, %v469_v15  }
  0x47   : > { %605 = vperm.xlu1 %2349, %v470_v16   ;;  %611 = vperm.xlu0 %2350, %v472_v18   ;;  %v1320_v18 = vld [vmem:[%s2727_s6 + $0x10] sm:$0xff] }
  0x4b   : > { %608 = vperm.xlu1 %2349, %v471_v17   ;;  %617 = vperm.xlu0 %2350, %v474_v20   ;;  %v1090_v17 = vld [vmem:[%s2564_s29] sm:$0xff] }
  0x4f   : > { %614 = vperm.xlu1 %2349, %v473_v19   ;;  %v1321_v19 = vld [vmem:[%s2727_s6 + $0x18] sm:$0xff] }
  0x53   : > { %620 = vperm.xlu1 %2349, %v475_v21  }
  0x90   : > { %v582_v27 = vpop.permute.xlu1 %581  ;;  %v576_v28 = vpop.permute.xlu0 %575 }
  0x91   : > { %vm622_vm2 = vcmp.eq.s32.totalorder %v2480_v26, %v576_v28  ;;  %vm624_vm3 = vcmp.eq.s32.totalorder %v2480_v26, %v582_v27  ;;  %v2272_v28 = vpack.c.bf16 %v1321_v19, %v1320_v18 }
  0x92   : > { %v1908_v30 = vsel %vm622_vm2, 1.0, %v2361_v29  ;;  %v1910_v39 = vsel %vm624_vm3, 1.0, %v2361_v29 }
  0x93   : > { %2108 = vmatprep.mubr.msk.f32.mxu0 %vm675_vm1, %v1908_v30  ;;  %v1092_v30 = vld [vmem:[%s2564_s29 + $0x10] sm:$0xff] }
  0x94   : > { %v585_v33 = vpop.permute.xlu1 %584  ;;  %v579_v34 = vpop.permute.xlu0 %578 }
  0x95   : > { %vm623_vm4 = vcmp.eq.s32.totalorder %v2480_v26, %v579_v34  ;;  %vm625_vm5 = vcmp.eq.s32.totalorder %v2480_v26, %v585_v33  ;;  %v1093_v33 = vld [vmem:[%s2564_s29 + $0x18] sm:$0xff] }
  0x96   : > { %v1909_v36 = vsel %vm623_vm4, 1.0, %v2361_v29  ;;  %v1911_v43 = vsel %vm625_vm5, 1.0, %v2361_v29 }
  0x97   : > { %2109 = vmatmul.mubr.msk.f32.vlgmr.msra.gmra.mrb[0].mxu0 %vm675_vm1, %v1909_v36 }
  0x98   : > { %2259 = vmatpush3.bf16.msra.mxu0 %v2458_v10  ;;  %v591_v40 = vpop.permute.xlu1 %590  ;;  %2111 = vmatprep.mubr.msk.f32.mxu0 %vm675_vm1, %v1910_v39  ;;  %v588_v41 = vpop.permute.xlu0 %587 }
  0x99   : > { %vm626_vm6 = vcmp.eq.s32.totalorder %v2480_v26, %v588_v41  ;;  %2261 = vmatprep.subr.bf16.mxu0 %v2260_v35  ;;  %vm627_vm7 = vcmp.eq.s32.totalorder %v2480_v26, %v591_v40  ;;  %v1096_v40 = vld [vmem:[%s2564_s29 + $0x30] sm:$0xff] }
  0x9a   : > { %v1912_v44 = vsel %vm626_vm6, 1.0, %v2361_v29  ;;  %v1913_v47 = vsel %vm627_vm7, 1.0, %v2361_v29 }
  0x9b   : > { %2112 = vmatmul.mubr.msk.f32.gmra.mrb[2].mxu0 %vm675_vm1, %v1911_v43  ;;  %v1097_v43 = vld [vmem:[%s2564_s29 + $0x38] sm:$0xff] }
  0x9c   : > { %v597_v45 = vpop.permute.xlu1 %596  ;;  %2114 = vmatprep.mubr.msk.f32.mxu0 %vm675_vm1, %v1912_v44  ;;  %v594_v46 = vpop.permute.xlu0 %593  ;;  %2263 = vmatpush3.bf16.msra.mxu0 %v2260_v35  ;;  %v1094_v35 = vld [vmem:[%s2564_s29 + $0x20] sm:$0xff] }
  0x9d   : > { %vm628_vm8 = vcmp.eq.s32.totalorder %v2480_v26, %v594_v46  ;;  %2265 = vmatprep.subr.bf16.mxu0 %v2264_v42  ;;  %vm629_vm9 = vcmp.eq.s32.totalorder %v2480_v26, %v597_v45  ;;  %v1098_v45 = vld [vmem:[%s2564_s29 + $0x40] sm:$0xff] }
  0x9e   : > { %v1914_v48 = vsel %vm628_vm8, 1.0, %v2361_v29  ;;  %v1915_v51 = vsel %vm629_vm9, 1.0, %v2361_v29 }
  0x9f   : > { %2115 = vmatmul.mubr.msk.f32.gmra.mrb[4].mxu0 %vm675_vm1, %v1913_v47  ;;  %v1099_v47 = vld [vmem:[%s2564_s29 + $0x48] sm:$0xff] }
  0xa0   : > { %2117 = vmatprep.mubr.msk.f32.mxu0 %vm675_vm1, %v1914_v48 }
  0xa1   : > { %v483_v49 = vpop.permute.xlu1 %482  ;;  %v480_v50 = vpop.permute.xlu0 %479 }
  0xa2   : > { %vm527_vm11 = vcmp.eq.s32.totalorder %v2480_v26, %v483_v49  ;;  %vm526_vm12 = vcmp.eq.s32.totalorder %v2480_v26, %v480_v50  ;;  %v1100_v49 = vld [vmem:[%s2564_s29 + $0x50] sm:$0xff]  ;;  %v1101_v50 = vld [vmem:[%s2564_s29 + $0x58] sm:$0xff] }
  0xa3   : > { %v1892_v52 = vsel %vm526_vm12, 1.0, %v2361_v29  ;;  %2118 = vmatmul.mubr.msk.f32.gmra.mrb[6].mxu0 %vm675_vm1, %v1915_v51  ;;  %v1893_v53 = vsel %vm527_vm11, 1.0, %v2361_v29  ;;  %v1102_v51 = vld [vmem:[%s2564_s29 + $0x60] sm:$0xff] }
  0xa4   : > { %2140 = vmatprep.mubr.msk.f32.mxu0 %vm873_vm10, %v1892_v52  ;;  %v1103_v52 = vld [vmem:[%s2564_s29 + $0x68] sm:$0xff] }
  0xa5   : > { %v486_v54 = vpop.permute.xlu1 %485  ;;  %v489_v55 = vpop.permute.xlu0 %488 }
  0xa6   : > { %vm528_vm13 = vcmp.eq.s32.totalorder %v2480_v26, %v486_v54  ;;  %vm529_vm14 = vcmp.eq.s32.totalorder %v2480_v26, %v489_v55  ;;  %v1538_v54 = vld [vmem:[%s2729_s8] sm:$0xff]  ;;  %v1539_v55 = vld [vmem:[%s2729_s8 + $0x8] sm:$0xff] }
  0xa7   : > { %v1894_v56 = vsel %vm528_vm13, 1.0, %v2361_v29  ;;  %2141 = vmatmul.mubr.msk.f32.vlgmr.msra.gmra.mrb[0].mxu0 %vm873_vm10, %v1893_v53  ;;  %v1895_v59 = vsel %vm529_vm14, 1.0, %v2361_v29  ;;  %vm1108_vm13 = vcmask 130048   ;;  %v1104_v53 = vld [vmem:[%s2564_s29 + $0x70] sm:$0xff] }
  0xa8   : > { %2267 = vmatpush3.bf16.msra.mxu0 %v2264_v42  ;;  %2143 = vmatprep.mubr.msk.f32.mxu0 %vm873_vm10, %v1894_v56  ;;  %v2276_v56 = vpack.c.bf16 %v1539_v55, %v1538_v54 }
  0xa9   : > { %v492_v57 = vpop.permute.xlu1 %491  ;;  %v495_v58 = vpop.permute.xlu0 %494 }
  0xaa   : > { %vm530_vm15 = vcmp.eq.s32.totalorder %v2480_v26, %v492_v57  ;;  %vm531_vm0 = vcmp.eq.s32.totalorder %v2480_v26, %v495_v58  ;;  %v2646_v57 = vld [vmem:[%s2725_s4] ss:$0 sm:$0xff] }
  0xab   : > { %v1896_v60 = vsel %vm530_vm15, 1.0, %v2361_v29  ;;  %2144 = vmatmul.mubr.msk.f32.gmra.mrb[2].mxu0 %vm873_vm10, %v1895_v59  ;;  %v1897_v63 = vsel %vm531_vm0, 1.0, %v2361_v29 }
  0xac   : > { %2146 = vmatprep.mubr.msk.f32.mxu0 %vm873_vm10, %v1896_v60 }
  0xad   : > { %v498_v61 = vpop.permute.xlu1 %497  ;;  %v501_v62 = vpop.permute.xlu0 %500 }
  0xae   : > { %vm532_vm2 = vcmp.eq.s32.totalorder %v2480_v26, %v498_v61  ;;  %vm533_vm3 = vcmp.eq.s32.totalorder %v2480_v26, %v501_v62 }
  0xaf   : > { %v1898_v0 = vsel %vm532_vm2, 1.0, %v2361_v29  ;;  %2147 = vmatmul.mubr.msk.f32.gmra.mrb[4].mxu0 %vm873_vm10, %v1897_v63  ;;  %v1899_v3 = vsel %vm533_vm3, 1.0, %v2361_v29 }
  0xb0   : > { %2149 = vmatprep.mubr.msk.f32.mxu0 %vm873_vm10, %v1898_v0  ;;  %v1540_v0 = vld [vmem:[%s2729_s8 + $0x10] sm:$0xff] }
  0xb1   : > { %v504_v1 = vpop.permute.xlu1 %503  ;;  %v507_v2 = vpop.permute.xlu0 %506 }
  0xb2   : > { %vm534_vm4 = vcmp.eq.s32.totalorder %v2480_v26, %v504_v1  ;;  %vm535_vm5 = vcmp.eq.s32.totalorder %v2480_v26, %v507_v2  ;;  %v1541_v1 = vld [vmem:[%s2729_s8 + $0x18] sm:$0xff] }
  0xb3   : > { %v1900_v4 = vsel %vm534_vm4, 1.0, %v2361_v29  ;;  %2150 = vmatmul.mubr.msk.f32.gmra.mrb[6].mxu0 %vm873_vm10, %v1899_v3  ;;  %v1901_v7 = vsel %vm535_vm5, 1.0, %v2361_v29 }
  0xb4   : > { %2152 = vmatprep.mubr.msk.f32.mxu0 %vm873_vm10, %v1900_v4 }
  0xb5   : > { %v510_v5 = vpop.permute.xlu1 %509  ;;  %v513_v6 = vpop.permute.xlu0 %512 }
  0xb6   : > { %vm536_vm6 = vcmp.eq.s32.totalorder %v2480_v26, %v510_v5  ;;  %vm537_vm7 = vcmp.eq.s32.totalorder %v2480_v26, %v513_v6 }
  0xb7   : > { %v1902_v8 = vsel %vm536_vm6, 1.0, %v2361_v29  ;;  %2153 = vmatmul.mubr.msk.f32.gmra.mrb[8].mxu0 %vm873_vm10, %v1901_v7  ;;  %v1903_v11 = vsel %vm537_vm7, 1.0, %v2361_v29  ;;  %v2280_v7 = vpack.c.bf16 %v1541_v1, %v1540_v0 }
  0xb8   : > { %2155 = vmatprep.mubr.msk.f32.mxu0 %vm873_vm10, %v1902_v8 }
  0xb9   : > { %v516_v9 = vpop.permute.xlu1 %515  ;;  %v519_v10 = vpop.permute.xlu0 %518 }
  0xba   : > { %vm538_vm8 = vcmp.eq.s32.totalorder %v2480_v26, %v516_v9  ;;  %vm539_vm9 = vcmp.eq.s32.totalorder %v2480_v26, %v519_v10 }
  0xbb   : > { %v1904_v12 = vsel %vm538_vm8, 1.0, %v2361_v29  ;;  %2156 = vmatmul.mubr.msk.f32.gmra.mrb[10].mxu0 %vm873_vm10, %v1903_v11  ;;  %v1905_v15 = vsel %vm539_vm9, 1.0, %v2361_v29 }
  0xbc   : > { %2158 = vmatprep.mubr.msk.f32.mxu0 %vm873_vm10, %v1904_v12 }
  0xbd   : > { %v522_v13 = vpop.permute.xlu1 %521  ;;  %v525_v14 = vpop.permute.xlu0 %524 }
  0xbe   : > { %vm540_vm11 = vcmp.eq.s32.totalorder %v2480_v26, %v522_v13  ;;  %vm541_vm12 = vcmp.eq.s32.totalorder %v2480_v26, %v525_v14 }
  0xbf   : > { %v1906_v16 = vsel %vm540_vm11, 1.0, %v2361_v29  ;;  %2159 = vmatmul.mubr.msk.f32.gmra.mrb[12].mxu0 %vm873_vm10, %v1905_v15  ;;  %v1907_v20 = vsel %vm541_vm12, 1.0, %v2361_v29 }
  0xc0   : > { %2161 = vmatprep.mubr.msk.f32.mxu0 %vm873_vm10, %v1906_v16 }
  0xc2   : > { %v600_v21 = vpop.permute.xlu1 %599  ;;  %v603_v22 = vpop.permute.xlu0 %602 }
  0xc3   : > { %2162 = vmatmul.mubr.msk.f32.gmra.mrb[14].mxu0 %vm873_vm10, %v1907_v20  ;;  %vm630_vm14 = vcmp.eq.s32.totalorder %v2480_v26, %v600_v21  ;;  %vm631_vm15 = vcmp.eq.s32.totalorder %v2480_v26, %v603_v22 }
  0xc4   : > { %2168 = vmatprep.mubr.msk.f32.mxu0 %vm1108_vm13, %v1090_v17  ;;  %v1917_v25 = vsel %vm631_vm15, 1.0, %v2361_v29  ;;  %v1916_v27 = vsel %vm630_vm14, 1.0, %v2361_v29 }
  0xc5   : > { %2120 = vmatprep.mubr.msk.f32.mxu1 %vm675_vm1, %v1916_v27 }
  0xc6   : > { %v606_v31 = vpop.permute.xlu1 %605  ;;  %2121 = vmatmul.mubr.msk.f32.vlgmr.msra.gmra.mrb[0].mxu1 %vm675_vm1, %v1917_v25  ;;  %v612_v32 = vpop.permute.xlu0 %611 }
  0xc7   : > { %2169 = vmatmul.mubr.msk.f32.vlgmr.msra.gmra.mrb[0].mxu0 %vm1108_vm13, %v1091_v23  ;;  %vm632_vm0 = vcmp.eq.s32.totalorder %v2480_v26, %v606_v31  ;;  %2271 = vmatpush3.bf16.msra.mxu1 %v2477_v24  ;;  %vm634_vm2 = vcmp.eq.s32.totalorder %v2480_v26, %v612_v32 }
  0xc8   : > { %2171 = vmatprep.mubr.msk.f32.mxu0 %vm1108_vm13, %v1092_v30  ;;  %v1918_v34 = vsel %vm632_vm0, 1.0, %v2361_v29  ;;  %2273 = vmatprep.subr.bf16.mxu1 %v2272_v28  ;;  %v1920_v24 = vsel %vm634_vm2, 1.0, %v2361_v29 }
  0xc9   : > { %2123 = vmatprep.mubr.msk.f32.mxu1 %vm675_vm1, %v1918_v34 }
  0xca   : > { %v609_v36 = vpop.permute.xlu1 %608  ;;  %v618_v37 = vpop.permute.xlu0 %617 }
  0xcb   : > { %2172 = vmatmul.mubr.msk.f32.gmra.mrb[2].mxu0 %vm1108_vm13, %v1093_v33  ;;  %vm633_vm3 = vcmp.eq.s32.totalorder %v2480_v26, %v609_v36  ;;  %2275 = vmatpush3.bf16.msra.mxu1 %v2272_v28  ;;  %vm636_vm4 = vcmp.eq.s32.totalorder %v2480_v26, %v618_v37 }
  0xcc   : > { %2174 = vmatprep.mubr.msk.f32.mxu0 %vm1108_vm13, %v1094_v35  ;;  %v1919_v39 = vsel %vm633_vm3, 1.0, %v2361_v29  ;;  %v1922_v42 = vsel %vm636_vm4, 1.0, %v2361_v29  ;;  %2277 = vmatprep.subr.bf16.mxu1 %v2276_v56 }
  0xcd   : > { %2124 = vmatmul.mubr.msk.f32.gmra.mrb[2].mxu1 %vm675_vm1, %v1919_v39 }
  0xce   : > { %v615_v41 = vpop.permute.xlu1 %614  ;;  %2126 = vmatprep.mubr.msk.f32.mxu1 %vm675_vm1, %v1920_v24 }
  0xcf   : > { %2175 = vmatmul.mubr.msk.f32.gmra.mrb[4].mxu0 %vm1108_vm13, %v1095_v38  ;;  %vm635_vm5 = vcmp.eq.s32.totalorder %v2480_v26, %v615_v41 }
  0xd0   : > { %2177 = vmatprep.mubr.msk.f32.mxu0 %vm1108_vm13, %v1096_v40  ;;  %v1921_v44 = vsel %vm635_vm5, 1.0, %v2361_v29 }
  0xd1   : > { %2127 = vmatmul.mubr.msk.f32.gmra.mrb[4].mxu1 %vm675_vm1, %v1921_v44 }
  0xd2   : > { %v621_v46 = vpop.permute.xlu1 %620  ;;  %2129 = vmatprep.mubr.msk.f32.mxu1 %vm675_vm1, %v1922_v42 }
  0xd3   : > { %2178 = vmatmul.mubr.msk.f32.gmra.mrb[6].mxu0 %vm1108_vm13, %v1097_v43  ;;  %vm637_vm6 = vcmp.eq.s32.totalorder %v2480_v26, %v621_v46 }
  0xd4   : > { %2180 = vmatprep.mubr.msk.f32.mxu0 %vm1108_vm13, %v1098_v45  ;;  %v1923_v48 = vsel %vm637_vm6, 1.0, %v2361_v29  ;;  %v1105_v29 = vld [vmem:[%s2564_s29 + $0x78] sm:$0xff] }
  0xd5   : > { %2130 = vmatmul.mubr.msk.f32.gmra.mrb[6].mxu1 %vm675_vm1, %v1923_v48 }
  0xd7   : > { %2181 = vmatmul.mubr.msk.f32.gmra.mrb[8].mxu0 %vm1108_vm13, %v1099_v47 }
  0xd8   : > { %2183 = vmatprep.mubr.msk.f32.mxu0 %vm1108_vm13, %v1100_v49 }
  0xdb   : > { %2184 = vmatmul.mubr.msk.f32.gmra.mrb[10].mxu0 %vm1108_vm13, %v1101_v50 }
  0xdc   : > { %2186 = vmatprep.mubr.msk.f32.mxu0 %vm1108_vm13, %v1102_v51 }
  0xdf   : > { %2187 = vmatmul.mubr.msk.f32.gmra.mrb[12].mxu0 %vm1108_vm13, %v1103_v52 }
  0xe0   : > { %2189 = vmatprep.mubr.msk.f32.mxu0 %vm1108_vm13, %v1104_v53 }
  0xe3   : > { %2190 = vmatmul.mubr.msk.f32.gmra.mrb[14].mxu0 %vm1108_vm13, %v1105_v29 }
 0x199   : > { %v2122_v58 = vpop.f32.mrb[0].mxu1 }
 0x19a   : > { %v2170_v59 = vpop.f32.mrb[0].mxu0  ;;  %v834_v60 = vpop.f32.mrb[1].mxu1  ;;  %v2294_v25 = vadd.f32 %v2122_v58, %v2646_v57 }
 0x19b   : > { %v2286_v61 = vadd.f32 %v2170_v59, %v2646_v57  ;;  %v1223_v62 = vpop.f32.mrb[1].mxu0  ;;  %v2296_v28 = vadd.f32 %v2646_v57, %v834_v60 }
 0x19c   : > { %v2287_v63 = vadd.f32 %v2646_v57, %v1223_v62 }
 0x19d   : > { %v1303_v4 = vmax.f32 %v2286_v61, 0.0 }
 0x19e   : > { %v1302_v2 = vmax.f32 %v2287_v63, 0.0  ;;  %v2173_v3 = vpop.f32.mrb[2].mxu0 }
 0x19f   : > { %v2288_v5 = vadd.f32 %v2173_v3, %v2646_v57  ;;  %v1233_v6 = vpop.f32.mrb[3].mxu0 }
 0x1a0   : > { %v2289_v8 = vadd.f32 %v2646_v57, %v1233_v6  ;;  %2200 = vmatprep.mubr.msk.f32.mxu1 %vm873_vm10, %v1302_v2  ;;  %v2125_v9 = vpop.f32.mrb[2].mxu1 }
 0x1a1   : > { %2201 = vmatmul.mubr.msk.f32.vlgmr.msra.gmra.mrb[8].mxu1 %vm873_vm10, %v1303_v4  ;;  %v844_v10 = vpop.f32.mrb[3].mxu1  ;;  %v1305_v13 = vmax.f32 %v2288_v5, 0.0  ;;  %v2298_v37 = vadd.f32 %v2125_v9, %v2646_v57 }
 0x1a2   : > { %v1304_v11 = vmax.f32 %v2289_v8, 0.0  ;;  %v2176_v12 = vpop.f32.mrb[4].mxu0  ;;  %2279 = vmatpush3.bf16.msra.mxu1 %v2276_v56  ;;  %v2300_v38 = vadd.f32 %v2646_v57, %v844_v10 }
 0x1a3   : > { %v2290_v14 = vadd.f32 %v2176_v12, %v2646_v57  ;;  %v1243_v15 = vpop.f32.mrb[5].mxu0  ;;  %2281 = vmatprep.subr.bf16.mxu1 %v2280_v7 }
 0x1a4   : > { %v2291_v16 = vadd.f32 %v2646_v57, %v1243_v15  ;;  %2203 = vmatprep.mubr.msk.f32.mxu1 %vm873_vm10, %v1304_v11  ;;  %v2128_v17 = vpop.f32.mrb[4].mxu1 }
 0x1a5   : > { %2204 = vmatmul.mubr.msk.f32.gmra.mrb[10].mxu1 %vm873_vm10, %v1305_v13  ;;  %v854_v18 = vpop.f32.mrb[5].mxu1  ;;  %v1307_v21 = vmax.f32 %v2290_v14, 0.0  ;;  %v2302_v44 = vadd.f32 %v2128_v17, %v2646_v57 }
 0x1a6   : > { %v1306_v19 = vmax.f32 %v2291_v16, 0.0  ;;  %v2179_v20 = vpop.f32.mrb[6].mxu0  ;;  %2283 = vmatpush3.bf16.msra.mxu1 %v2280_v7  ;;  %v2304_v46 = vadd.f32 %v2646_v57, %v854_v18 }
 0x1a7   : > { %v2292_v22 = vadd.f32 %v2179_v20, %v2646_v57  ;;  %v1253_v23 = vpop.f32.mrb[7].mxu0 }
 0x1a8   : > { %v2293_v27 = vadd.f32 %v2646_v57, %v1253_v23  ;;  %2206 = vmatprep.mubr.msk.f32.mxu1 %vm873_vm10, %v1306_v19  ;;  %v2131_v30 = vpop.f32.mrb[6].mxu1 }
 0x1a9   : > { %2207 = vmatmul.mubr.msk.f32.gmra.mrb[12].mxu1 %vm873_vm10, %v1307_v21  ;;  %v864_v31 = vpop.f32.mrb[7].mxu1  ;;  %v1309_v34 = vmax.f32 %v2292_v22, 0.0  ;;  %v2306_v52 = vadd.f32 %v2131_v30, %v2646_v57 }
 0x1aa   : > { %v1308_v32 = vmax.f32 %v2293_v27, 0.0  ;;  %v2182_v33 = vpop.f32.mrb[8].mxu0  ;;  %v2308_v29 = vadd.f32 %v2646_v57, %v864_v31  ;;  %v1974_v57 = vld [vmem:[%s2728_s7] ss:$0 sm:$0xff] }
 0x1ab   : > { %v2295_v35 = vadd.f32 %v2294_v25, %v2182_v33  ;;  %v1263_v36 = vpop.f32.mrb[9].mxu0 }
 0x1ac   : > { %v2297_v24 = vadd.f32 %v2296_v28, %v1263_v36  ;;  %2209 = vmatprep.mubr.msk.f32.mxu1 %vm873_vm10, %v1308_v32 }
 0x1ad   : > { %2210 = vmatmul.mubr.msk.f32.gmra.mrb[14].mxu1 %vm873_vm10, %v1309_v34  ;;  %v1311_v41 = vmax.f32 %v2295_v35, 0.0 }
 0x1ae   : > { %v1310_v39 = vmax.f32 %v2297_v24, 0.0  ;;  %v2185_v40 = vpop.f32.mrb[10].mxu0 }
 0x1af   : > { %v2299_v42 = vadd.f32 %v2298_v37, %v2185_v40  ;;  %v1273_v43 = vpop.f32.mrb[11].mxu0 }
 0x1b0   : > { %v2301_v45 = vadd.f32 %v2300_v38, %v1273_v43  ;;  %2212 = vmatprep.mubr.msk.f32.mxu1 %vm873_vm10, %v1310_v39 }
 0x1b1   : > { %2213 = vmatmul.mubr.msk.f32.gmra.mrb[16].mxu1 %vm873_vm10, %v1311_v41  ;;  %v1313_v49 = vmax.f32 %v2299_v42, 0.0 }
 0x1b2   : > { %v1312_v47 = vmax.f32 %v2301_v45, 0.0  ;;  %v2188_v48 = vpop.f32.mrb[12].mxu0 }
 0x1b3   : > { %v2303_v50 = vadd.f32 %v2302_v44, %v2188_v48  ;;  %v1283_v51 = vpop.f32.mrb[13].mxu0 }
 0x1b4   : > { %v2305_v53 = vadd.f32 %v2304_v46, %v1283_v51  ;;  %2215 = vmatprep.mubr.msk.f32.mxu1 %vm873_vm10, %v1312_v47 }
 0x1b5   : > { %2216 = vmatmul.mubr.msk.f32.gmra.mrb[18].mxu1 %vm873_vm10, %v1313_v49  ;;  %v1315_v56 = vmax.f32 %v2303_v50, 0.0  ;;  %v1991_v49 = vld [vmem:[%s2730_s9] ss:$0 sm:$0xff] }
 0x1b6   : > { %v1314_v54 = vmax.f32 %v2305_v53, 0.0  ;;  %v2191_v55 = vpop.f32.mrb[14].mxu0 }
 0x1b7   : > { %v2307_v58 = vadd.f32 %v2306_v52, %v2191_v55  ;;  %v1293_v59 = vpop.f32.mrb[15].mxu0 }
 0x1b8   : > { %v2309_v60 = vadd.f32 %v2308_v29, %v1293_v59  ;;  %2218 = vmatprep.mubr.msk.f32.mxu1 %vm873_vm10, %v1314_v54 }
 0x1b9   : > { %2219 = vmatmul.mubr.msk.f32.gmra.mrb[20].mxu1 %vm873_vm10, %v1315_v56  ;;  %v1317_v62 = vmax.f32 %v2307_v58, 0.0 }
 0x1ba   : > { %v1316_v61 = vmax.f32 %v2309_v60, 0.0 }
 0x1bc   : > { %2221 = vmatprep.mubr.msk.f32.mxu1 %vm873_vm10, %v1316_v61 }
 0x1bd   : > { %2222 = vmatmul.mubr.msk.f32.gmra.mrb[22].mxu1 %vm873_vm10, %v1317_v62 }
 0x274   : > { %v2202_v63 = vpop.f32.mrb[8].mxu1 }
 0x275   : > { %v1449_v0 = vadd.f32 %v2202_v63, %v1974_v57  ;;  %v1443_v1 = vpop.f32.mrb[9].mxu1 }
 0x276   : > { %v1444_v2 = vadd.f32 %v1974_v57, %v1443_v1 }
 0x277   : > { %v1523_v5 = vmax.f32 %v1449_v0, 0.0 }
 0x278   : > { %v1522_v3 = vmax.f32 %v1444_v2, 0.0  ;;  %v2205_v4 = vpop.f32.mrb[10].mxu1 }
 0x279   : > { %v1459_v6 = vadd.f32 %v2205_v4, %v1974_v57  ;;  %v1453_v7 = vpop.f32.mrb[11].mxu1 }
 0x27a   : > { %v1454_v8 = vadd.f32 %v1974_v57, %v1453_v7  ;;  %2232 = vmatprep.mubr.msk.f32.mxu1 %vm873_vm10, %v1522_v3 }
 0x27b   : > { %2233 = vmatmul.mubr.msk.f32.vlgmr.msra.gmra.mrb[24].mxu1 %vm873_vm10, %v1523_v5  ;;  %v1525_v11 = vmax.f32 %v1459_v6, 0.0 }
 0x27c   : > { %v1524_v9 = vmax.f32 %v1454_v8, 0.0  ;;  %v2208_v10 = vpop.f32.mrb[12].mxu1 }
 0x27d   : > { %v1469_v12 = vadd.f32 %v2208_v10, %v1974_v57  ;;  %v1463_v13 = vpop.f32.mrb[13].mxu1 }
 0x27e   : > { %v1464_v14 = vadd.f32 %v1974_v57, %v1463_v13  ;;  %2235 = vmatprep.mubr.msk.f32.mxu1 %vm873_vm10, %v1524_v9 }
 0x27f   : > { %2236 = vmatmul.mubr.msk.f32.gmra.mrb[26].mxu1 %vm873_vm10, %v1525_v11  ;;  %v1527_v17 = vmax.f32 %v1469_v12, 0.0 }
 0x280   : > { %v1526_v15 = vmax.f32 %v1464_v14, 0.0  ;;  %v2211_v16 = vpop.f32.mrb[14].mxu1 }
 0x281   : > { %v1479_v18 = vadd.f32 %v2211_v16, %v1974_v57  ;;  %v1473_v19 = vpop.f32.mrb[15].mxu1 }
 0x282   : > { %v1474_v20 = vadd.f32 %v1974_v57, %v1473_v19  ;;  %2238 = vmatprep.mubr.msk.f32.mxu1 %vm873_vm10, %v1526_v15 }
 0x283   : > { %2239 = vmatmul.mubr.msk.f32.gmra.mrb[28].mxu1 %vm873_vm10, %v1527_v17  ;;  %v1529_v23 = vmax.f32 %v1479_v18, 0.0  ;;  %v1776_v17 = vstv %s2008_s20 }
 0x284   : > { %v1528_v21 = vmax.f32 %v1474_v20, 0.0  ;;  %v2214_v22 = vpop.f32.mrb[16].mxu1  ;;  %v1777_v18 = vadd.s32 %v1776_v17, %v2480_v26 }
 0x285   : > { %v1489_v25 = vadd.f32 %v2214_v22, %v1974_v57  ;;  %v1483_v27 = vpop.f32.mrb[17].mxu1 }
 0x286   : > { %v1484_v28 = vadd.f32 %v1974_v57, %v1483_v27  ;;  %2241 = vmatprep.mubr.msk.f32.mxu1 %vm873_vm10, %v1528_v21  ;;  %vm1778_vm1 = vcmp.lt.s32.totalorder %v1777_v18, 300 }
 0x287   : > { %2242 = vmatmul.mubr.msk.f32.gmra.mrb[30].mxu1 %vm873_vm10, %v1529_v23  ;;  %v1531_v32 = vmax.f32 %v1489_v25, 0.0 }
 0x288   : > { %v1530_v30 = vmax.f32 %v1484_v28, 0.0  ;;  %v2217_v31 = vpop.f32.mrb[18].mxu1 }
 0x289   : > { %v1499_v33 = vadd.f32 %v2217_v31, %v1974_v57  ;;  %v1493_v34 = vpop.f32.mrb[19].mxu1 }
 0x28a   : > { %v1494_v35 = vadd.f32 %v1974_v57, %v1493_v34  ;;  %2244 = vmatprep.mubr.msk.f32.mxu1 %vm873_vm10, %v1530_v30 }
 0x28b   : > { %2245 = vmatmul.mubr.msk.f32.gmra.mrb[32].mxu1 %vm873_vm10, %v1531_v32  ;;  %v1533_v24 = vmax.f32 %v1499_v33, 0.0 }
 0x28c   : > { %v1532_v36 = vmax.f32 %v1494_v35, 0.0  ;;  %v2220_v37 = vpop.f32.mrb[20].mxu1 }
 0x28d   : > { %v1509_v38 = vadd.f32 %v2220_v37, %v1974_v57  ;;  %v1503_v39 = vpop.f32.mrb[21].mxu1 }
 0x28e   : > { %v1504_v40 = vadd.f32 %v1974_v57, %v1503_v39  ;;  %2247 = vmatprep.mubr.msk.f32.mxu1 %vm873_vm10, %v1532_v36 }
 0x28f   : > { %2248 = vmatmul.mubr.msk.f32.gmra.mrb[34].mxu1 %vm873_vm10, %v1533_v24  ;;  %v1535_v43 = vmax.f32 %v1509_v38, 0.0 }
 0x290   : > { %v1534_v41 = vmax.f32 %v1504_v40, 0.0  ;;  %v2223_v42 = vpop.f32.mrb[22].mxu1 }
 0x291   : > { %v1519_v44 = vadd.f32 %v2223_v42, %v1974_v57  ;;  %v1513_v45 = vpop.f32.mrb[23].mxu1 }
 0x292   : > { %v1514_v46 = vadd.f32 %v1974_v57, %v1513_v45  ;;  %2250 = vmatprep.mubr.msk.f32.mxu1 %vm873_vm10, %v1534_v41 }
 0x293   : > { %2251 = vmatmul.mubr.msk.f32.gmra.mrb[36].mxu1 %vm873_vm10, %v1535_v43  ;;  %v1537_v48 = vmax.f32 %v1519_v44, 0.0 }
 0x294   : > { %v1536_v47 = vmax.f32 %v1514_v46, 0.0 }
 0x296   : > { %2253 = vmatprep.mubr.msk.f32.mxu1 %vm873_vm10, %v1536_v47 }
 0x297   : > { %2254 = vmatmul.mubr.msk.f32.gmra.mrb[38].mxu1 %vm873_vm10, %v1537_v48  ;;  %vm1783_vm10 = vcmask 7168  }
 0x34e   : > { %v2234_v50 = vpop.f32.mrb[24].mxu1 }
 0x34f   : > { %v1663_v51 = vpop.f32.mrb[25].mxu1  ;;  %v1669_v54 = vadd.f32 %v2234_v50, %v1991_v49 }
 0x350   : > { %v1664_v52 = vadd.f32 %v1991_v49, %v1663_v51 }
 0x352   : > { %v2237_v53 = vpop.f32.mrb[26].mxu1  ;;  %1742 = vxpose.xlu0.b32.start [1/16] (narrow) %v1664_v52, 8 }
 0x353   : > { %v1673_v29 = vpop.f32.mrb[27].mxu1  ;;  %v1679_v61 = vadd.f32 %v2237_v53, %v1991_v49 }
 0x354   : > { %v1674_v58 = vadd.f32 %v1991_v49, %v1673_v29 }
 0x356   : > { %v2240_v55 = vpop.f32.mrb[28].mxu1  ;;  %1743 = vxpose.xlu0.b32.cont [2/16] (narrow) %v1669_v54, 8 }
 0x357   : > { %v1683_v56 = vpop.f32.mrb[29].mxu1  ;;  %v1689_v2 = vadd.f32 %v2240_v55, %v1991_v49 }
 0x358   : > { %v1684_v63 = vadd.f32 %v1991_v49, %v1683_v56 }
 0x35a   : > { %v2243_v59 = vpop.f32.mrb[30].mxu1  ;;  %1744 = vxpose.xlu0.b32.cont [3/16] (narrow) %v1674_v58, 8 }
 0x35b   : > { %v1693_v60 = vpop.f32.mrb[31].mxu1  ;;  %v1699_v8 = vadd.f32 %v2243_v59, %v1991_v49 }
 0x35c   : > { %v1694_v5 = vadd.f32 %v1991_v49, %v1693_v60 }
 0x35e   : > { %v2246_v62 = vpop.f32.mrb[32].mxu1  ;;  %1745 = vxpose.xlu0.b32.cont [4/16] (narrow) %v1679_v61, 8 }
 0x35f   : > { %v1703_v57 = vpop.f32.mrb[33].mxu1  ;;  %v1709_v10 = vadd.f32 %v2246_v62, %v1991_v49 }
 0x360   : > { %v1704_v9 = vadd.f32 %v1991_v49, %v1703_v57 }
 0x362   : > { %v2249_v0 = vpop.f32.mrb[34].mxu1  ;;  %1746 = vxpose.xlu0.b32.cont [5/16] (narrow) %v1684_v63, 8 }
 0x363   : > { %v1713_v1 = vpop.f32.mrb[35].mxu1  ;;  %v1719_v12 = vadd.f32 %v2249_v0, %v1991_v49 }
 0x364   : > { %v1714_v11 = vadd.f32 %v1991_v49, %v1713_v1 }
 0x366   : > { %v2252_v3 = vpop.f32.mrb[36].mxu1  ;;  %1747 = vxpose.xlu0.b32.cont [6/16] (narrow) %v1689_v2, 8 }
 0x367   : > { %v1723_v4 = vpop.f32.mrb[37].mxu1  ;;  %v1729_v14 = vadd.f32 %v2252_v3, %v1991_v49 }
 0x368   : > { %v1724_v13 = vadd.f32 %v1991_v49, %v1723_v4 }
 0x36a   : > { %v2255_v6 = vpop.f32.mrb[38].mxu1  ;;  %1748 = vxpose.xlu0.b32.cont [7/16] (narrow) %v1694_v5, 8 }
 0x36b   : > { %v1733_v7 = vpop.f32.mrb[39].mxu1  ;;  %v1739_v16 = vadd.f32 %v2255_v6, %v1991_v49 }
 0x36c   : > { %v1734_v15 = vadd.f32 %v1991_v49, %v1733_v7 }
 0x36e   : > { %1749 = vxpose.xlu0.b32.cont [8/16] (narrow) %v1699_v8, 8 }
 0x372   : > { %1750 = vxpose.xlu0.b32.cont [9/16] (narrow) %v1704_v9, 8 }
 0x376   : > { %1751 = vxpose.xlu0.b32.cont [10/16] (narrow) %v1709_v10, 8 }
 0x37a   : > { %1752 = vxpose.xlu0.b32.cont [11/16] (narrow) %v1714_v11, 8 }
 0x37e   : > { %1753 = vxpose.xlu0.b32.cont [12/16] (narrow) %v1719_v12, 8 }
 0x382   : > { %1754 = vxpose.xlu0.b32.cont [13/16] (narrow) %v1724_v13, 8 }
 0x386   : > { %1755 = vxpose.xlu0.b32.cont [14/16] (narrow) %v1729_v14, 8 }
 0x38a   : > { %1756 = vxpose.xlu0.b32.cont [15/16] (narrow) %v1734_v15, 8 }
 0x38e   : > { %1757 = vxpose.xlu0.b32.end [16/16] (narrow) %v1739_v16, 8 }
 0x3d2   : > { %v1758_v19 = vpop.trf.xlu0 }
 0x3d3   : > { %1774 = vst [vmem:[%s455_s14] sm:$0xff] %v1758_v19  ;;  %v1779_v20 = vand.u32 2147483647, %v1758_v19 }
 0x3d5   : > { %v1780_v21 = vsel %vm1778_vm1, %v1779_v20, 0.0 }
 0x3d6   : > { %1781 = vadd.xlane.f32.xlu1 %v1780_v21 }
 0x463   : > { %v1782_v22 = vpop.xlane.xlu1 %1781 }
 0x464   : > { %1784 = vst.msk [vmem:[%s459_s21] sm:$0xff] %vm1783_vm10, %v1782_v22 }
 0x465 PF: > { %s22_s17 = sadd.s32 1, %s2357_s17  }
 0x466   : > { %p19_p5 = scmp.ge.s32.totalorder %s22_s17, 5  }
 0x468   :  { %21 = sbr.rel (!%p19_p5) target bundleno = 1 (0x1), region = 105 }

</bundles_post_ra>
